<compile_context>
chip_gen: v6e
topology: v6e:2x2x1
jax: 0.10.0
libtpu: 0.0.40
codegen_flags: <defaults>
</compile_context>

<pallas_src>
import functools
import math

import jax
import jax.numpy as jnp
from jax.experimental import pallas as pl
from jax.experimental.pallas import tpu as pltpu


def _layer_norm(x, g, b, eps=1e-5):
    mu = jnp.mean(x, axis=-1, keepdims=True)
    xc = x - mu
    var = jnp.mean(xc * xc, axis=-1, keepdims=True)
    return xc * jax.lax.rsqrt(var + eps) * g + b


def transformer_block_kernel(q_in_ref, k_in_ref, v_in_ref,
                             wq_ref, wk_ref, wv_ref,
                             bq_ref, bk_ref, bv_ref,
                             wo_ref, bo_ref,
                             g1_ref, be1_ref,
                             w1_ref, b1_ref,
                             w2_ref, b2_ref,
                             g2_ref, be2_ref,
                             out_ref,
                             *, num_heads, head_dim, seq_len, matmul_dtype):
    md = matmul_dtype
    embed = num_heads * head_dim

    xq = q_in_ref[...]                           # (R, E) query rows, residual precision
    rows = xq.shape[0]
    bt = rows // seq_len

    query_res = xq if xq.dtype == jnp.float32 else xq.astype(jnp.float32)
    xq_md = xq if xq.dtype == md else xq.astype(md)
    xk = k_in_ref[...]                           # already streamed in md (bf16 default)
    xv = v_in_ref[...]
    xk_md = xk if xk.dtype == md else xk.astype(md)
    xv_md = xv if xv.dtype == md else xv.astype(md)

    # --- in-projections: three (R,E)x(E,E) MXU matmuls (K = E), f32 accumulate ---
    q = jnp.dot(xq_md, wq_ref[...], preferred_element_type=jnp.float32) + bq_ref[...]
    k = jnp.dot(xk_md, wk_ref[...], preferred_element_type=jnp.float32) + bk_ref[...]
    v = jnp.dot(xv_md, wv_ref[...], preferred_element_type=jnp.float32) + bv_ref[...]
    q = q * (1.0 / math.sqrt(head_dim))

    # Cast ONCE to the MXU dtype before the head split (no per-head casts).
    q = q.astype(md)
    k = k.astype(md)
    v = v.astype(md)

    # --- head split to a single head-major batch (H*bt, S, d) ---
    # Lane-dim slices are the unavoidable relayout when head_dim < 128; they are done once
    # per tensor (data movement only) so all attention matmuls are a single batched einsum.
    def head_major(x):
        return jnp.concatenate(
            [x[:, h * head_dim:(h + 1) * head_dim].reshape(bt, seq_len, head_dim)
             for h in range(num_heads)], axis=0)

    qh = head_major(q)
    kh = head_major(k)
    vh = head_major(v)

    # --- one batched einsum pair for ALL heads (single leading batch dim = H*bt) ---
    s = jnp.einsum("bqd,bkd->bqk", qh, kh, preferred_element_type=jnp.float32)
    s = s - jnp.max(s, axis=-1, keepdims=True)
    p = jnp.exp(s)
    p = p * pl.reciprocal(jnp.sum(p, axis=-1, keepdims=True), approx=True)
    o = jnp.einsum("bqk,bkd->bqd", p.astype(md), vh,
                   preferred_element_type=jnp.float32)        # (H*bt, S, d), f32

    # --- back to (R, E) and ONE out-projection dot (K = E) ---
    o_r = jnp.concatenate(
        [o[h * bt:(h + 1) * bt].reshape(rows, head_dim) for h in range(num_heads)],
        axis=-1)                                              # (R, E)
    attn = jnp.dot(o_r.astype(md), wo_ref[...],
                   preferred_element_type=jnp.float32) + bo_ref[...]

    # --- residual + LayerNorm 1 (f32) ---
    x = _layer_norm(attn + query_res, g1_ref[...], be1_ref[...])

    # --- feed-forward: Linear -> ReLU -> Linear (hidden held at MXU width) ---
    h1 = jnp.dot(x.astype(md), w1_ref[...],
                 preferred_element_type=jnp.float32) + b1_ref[...]
    h1 = jnp.maximum(h1, 0.0).astype(md)
    ff = jnp.dot(h1, w2_ref[...],
                 preferred_element_type=jnp.float32) + b2_ref[...]

    # --- residual + LayerNorm 2 (f32) ---
    out = _layer_norm(ff + x, g2_ref[...], be2_ref[...])
    out_ref[...] = out.astype(out_ref.dtype)


def _pick_block_batch(B, S, E, Hff, num_heads, md, vmem_budget_bytes):
    """Largest batch-block that (a) divides B, (b) keeps grid >= 2 (so v7x uses both
    TensorCores), and (c) whose rough VMEM working set fits the budget."""
    md_bytes = jnp.dtype(md).itemsize
    weight_bytes = (4 * E * E + 2 * E * Hff) * md_bytes
    param_bytes = (8 * E + Hff) * 4

    def need(bt):
        R = bt * S
        io = 2 * (R * E * 4 + 2 * R * E * md_bytes) + 2 * R * E * 4   # dbl-buffered in/out
        inter = (3 * R * E * 4 + 3 * R * E * md_bytes                 # q/k/v f32 + md
                 + 2 * num_heads * bt * S * S * 4                     # scores + probs
                 + R * Hff * 4 + R * Hff * md_bytes                   # FFN hidden
                 + 4 * R * E * 4)                                     # attn/x/ff/out
        return weight_bytes + param_bytes + io + inter

    cands = [bt for bt in range(B, 0, -1) if B % bt == 0]
    pref = [bt for bt in cands if B // bt >= 2] or cands
    for bt in pref:
        if need(bt) <= 0.8 * vmem_budget_bytes:
            return bt
    return pref[-1]


def transformer_block(value, key, query, params, *, num_heads,
                      block_batch=None, matmul_dtype=jnp.bfloat16,
                      vmem_budget_bytes=48 * 1024 * 1024):
    B, S, E = query.shape
    assert key.shape == (B, S, E) and value.shape == (B, S, E)
    assert E % num_heads == 0
    head_dim = E // num_heads
    Hff = params["w1"].shape[0]
    md = matmul_dtype

    if block_batch is None:
        block_batch = _pick_block_batch(B, S, E, Hff, num_heads, md, vmem_budget_bytes)
    assert B % block_batch == 0, "block_batch must divide batch"
    Bt = block_batch
    R = Bt * S

    # Weights pre-transposed to (in, out) and pre-cast to the MXU dtype (halves weight DMA
    # on v5e/v6e/v7x); biases and LayerNorm params stay f32.
    wq_t = params["wq"].T.astype(md)
    wk_t = params["wk"].T.astype(md)
    wv_t = params["wv"].T.astype(md)
    wo_t = params["wo"].T.astype(md)
    w1_t = params["w1"].T.astype(md)
    w2_t = params["w2"].T.astype(md)
    bq = params["bq"].reshape(1, E).astype(jnp.float32)
    bk = params["bk"].reshape(1, E).astype(jnp.float32)
    bv = params["bv"].reshape(1, E).astype(jnp.float32)
    bo = params["bo"].reshape(1, E).astype(jnp.float32)
    b1 = params["b1"].reshape(1, Hff).astype(jnp.float32)
    b2 = params["b2"].reshape(1, E).astype(jnp.float32)
    g1 = params["g1"].reshape(1, E).astype(jnp.float32)
    be1 = params["be1"].reshape(1, E).astype(jnp.float32)
    g2 = params["g2"].reshape(1, E).astype(jnp.float32)
    be2 = params["be2"].reshape(1, E).astype(jnp.float32)

    # Stream key/value at the MXU width; keep query at full precision for the residual.
    q_in = query.reshape(B * S, E)
    k_in = key.reshape(B * S, E).astype(md)
    v_in = value.reshape(B * S, E).astype(md)

    def full(arr):
        return pl.BlockSpec(arr.shape, lambda b, nd=arr.ndim: (0,) * nd)

    row_spec = pl.BlockSpec((R, E), lambda b: (b, 0))

    operands = (q_in, k_in, v_in, wq_t, wk_t, wv_t, bq, bk, bv, wo_t, bo,
                g1, be1, w1_t, b1, w2_t, b2, g2, be2)
    in_specs = [row_spec, row_spec, row_spec,
                full(wq_t), full(wk_t), full(wv_t),
                full(bq), full(bk), full(bv),
                full(wo_t), full(bo),
                full(g1), full(be1),
                full(w1_t), full(b1),
                full(w2_t), full(b2),
                full(g2), full(be2)]

    flops = (6 * B * S * E * E          # q/k/v in-projections
             + 4 * B * S * S * E        # scores + attention * V
             + 2 * B * S * E * E        # out-projection
             + 4 * B * S * E * Hff)     # FFN
    transcendentals = (B * num_heads * S * S      # softmax exp
                       + B * num_heads * S        # reciprocal
                       + 2 * B * S)               # LayerNorm rsqrt
    bytes_accessed = (sum(int(a.size) * a.dtype.itemsize for a in operands)
                      + B * S * E * query.dtype.itemsize)

    kernel = functools.partial(transformer_block_kernel,
                               num_heads=num_heads, head_dim=head_dim,
                               seq_len=S, matmul_dtype=md)

    out2d = pl.pallas_call(
        kernel,
        out_shape=jax.ShapeDtypeStruct((B * S, E), query.dtype),
        grid_spec=pltpu.PrefetchScalarGridSpec(
            num_scalar_prefetch=0,
            grid=(B // Bt,),
            in_specs=in_specs,
            out_specs=row_spec),
        compiler_params=pltpu.CompilerParams(
            dimension_semantics=("parallel",),
            vmem_limit_bytes=int(vmem_budget_bytes)),
        cost_estimate=pl.CostEstimate(flops=int(flops),
                                      transcendentals=int(transcendentals),
                                      bytes_accessed=int(bytes_accessed)),
    )(*operands)

    return out2d.reshape(B, S, E)


def reference(value, key, query, params, num_heads):
    """Pure-JAX reference mirroring PyTorch nn.MultiheadAttention + block math."""
    B, S, E = query.shape
    head_dim = E // num_heads
    q = query @ params["wq"].T + params["bq"]
    k = key @ params["wk"].T + params["bk"]
    v = value @ params["wv"].T + params["bv"]

    def split(x):
        return x.reshape(B, S, num_heads, head_dim).transpose(0, 2, 1, 3)

    qh, kh, vh = split(q), split(k), split(v)
    s = jnp.einsum("bhqd,bhkd->bhqk", qh, kh) / jnp.sqrt(jnp.float32(head_dim))
    p = jax.nn.softmax(s, axis=-1)
    o = jnp.einsum("bhqk,bhkd->bhqd", p, vh).transpose(0, 2, 1, 3).reshape(B, S, E)
    attn = o @ params["wo"].T + params["bo"]

    def ln(x, g, b):
        mu = jnp.mean(x, -1, keepdims=True)
        var = jnp.mean((x - mu) ** 2, -1, keepdims=True)
        return (x - mu) * jax.lax.rsqrt(var + 1e-5) * g + b

    x = ln(attn + query, params["g1"], params["be1"])
    h1 = jax.nn.relu(x @ params["w1"].T + params["b1"])
    ff = h1 @ params["w2"].T + params["b2"]
    return ln(ff + x, params["g2"], params["be2"])


if __name__ == "__main__":
    B, S, E = 2, 8, 32
    heads = 4
    forward_expansion = 4
    Hff = forward_expansion * E

    key0 = jax.random.PRNGKey(0)
    ks = jax.random.split(key0, 16)
    init = lambda k, shp: (0.05 * jax.random.normal(k, shp)).astype(jnp.float32)

    params = {
        # MultiheadAttention in_proj (split into q/k/v) and out_proj — PyTorch (out, in)
        "wq": init(ks[0], (E, E)), "bq": init(ks[1], (E,)),
        "wk": init(ks[2], (E, E)), "bk": init(ks[3], (E,)),
        "wv": init(ks[4], (E, E)), "bv": init(ks[5], (E,)),
        "wo": init(ks[6], (E, E)), "bo": init(ks[7], (E,)),
        # LayerNorm 1 / 2
        "g1": jnp.ones((E,), jnp.float32), "be1": jnp.zeros((E,), jnp.float32),
        "g2": jnp.ones((E,), jnp.float32), "be2": jnp.zeros((E,), jnp.float32),
        # feed-forward
        "w1": init(ks[8], (Hff, E)), "b1": init(ks[9], (Hff,)),
        "w2": init(ks[10], (E, Hff)), "b2": init(ks[11], (E,)),
    }

    query = jax.random.normal(ks[12], (B, S, E), jnp.float32)
    key_t = jax.random.normal(ks[13], (B, S, E), jnp.float32)
    value = jax.random.normal(ks[14], (B, S, E), jnp.float32)

    ref = reference(value, key_t, query, params, heads)

    # Exact (f32 MXU) path: tight check of the math; only drift source is the
    # approximate EUP reciprocal in the softmax normalization.
    out_f32 = jax.block_until_ready(
        transformer_block(value, key_t, query, params, num_heads=heads,
                          matmul_dtype=jnp.float32))
    assert out_f32.shape == (B, S, E)
    assert jnp.allclose(out_f32, ref, rtol=5e-3, atol=5e-3), "f32 path mismatch"

    # bf16-MXU path (default; recommended on v5e/v6e/v7x) with a correspondingly
    # looser tolerance for bf16 operand rounding.
    out_bf16 = jax.block_until_ready(
        transformer_block(value, key_t, query, params, num_heads=heads))
    assert out_bf16.shape == (B, S, E)
    assert jnp.allclose(out_bf16, ref, rtol=5e-2, atol=5e-2), "bf16 path mismatch"

    print("KERNEL_OK")
</pallas_src>

<mosaic_0001>
module attributes {stable_mosaic.version = 11 : i64} {
  func.func @transformer_block_kernel(%arg0: i32, %arg1: memref<8x32xf32, #tpu.memory_space<vmem>>, %arg2: memref<8x32xf32, #tpu.memory_space<vmem>>, %arg3: memref<8x32xf32, #tpu.memory_space<vmem>>, %arg4: memref<32x32xf32, #tpu.memory_space<vmem>>, %arg5: memref<32x32xf32, #tpu.memory_space<vmem>>, %arg6: memref<32x32xf32, #tpu.memory_space<vmem>>, %arg7: memref<1x32xf32, #tpu.memory_space<vmem>>, %arg8: memref<1x32xf32, #tpu.memory_space<vmem>>, %arg9: memref<1x32xf32, #tpu.memory_space<vmem>>, %arg10: memref<32x32xf32, #tpu.memory_space<vmem>>, %arg11: memref<1x32xf32, #tpu.memory_space<vmem>>, %arg12: memref<1x32xf32, #tpu.memory_space<vmem>>, %arg13: memref<1x32xf32, #tpu.memory_space<vmem>>, %arg14: memref<32x128xf32, #tpu.memory_space<vmem>>, %arg15: memref<1x128xf32, #tpu.memory_space<vmem>>, %arg16: memref<128x32xf32, #tpu.memory_space<vmem>>, %arg17: memref<1x32xf32, #tpu.memory_space<vmem>>, %arg18: memref<1x32xf32, #tpu.memory_space<vmem>>, %arg19: memref<1x32xf32, #tpu.memory_space<vmem>>, %arg20: memref<8x32xf32, #tpu.memory_space<vmem>>) attributes {dimension_semantics = [#tpu.dimension_semantics<parallel>], iteration_bounds = array<i64: 2>, scalar_prefetch = 0 : i64, scratch_operands = 0 : i64, tpu.core_type = #tpu.core_type<tc>, window_params = [{transform_indices = @transform_0, window_bounds = array<i64: 8, 32>}, {transform_indices = @transform_1, window_bounds = array<i64: 8, 32>}, {transform_indices = @transform_2, window_bounds = array<i64: 8, 32>}, {pipeline_mode = #tpu.pipeline_mode<synchronous>, transform_indices = @transform_3, window_bounds = array<i64: 32, 32>}, {pipeline_mode = #tpu.pipeline_mode<synchronous>, transform_indices = @transform_4, window_bounds = array<i64: 32, 32>}, {pipeline_mode = #tpu.pipeline_mode<synchronous>, transform_indices = @transform_5, window_bounds = array<i64: 32, 32>}, {pipeline_mode = #tpu.pipeline_mode<synchronous>, transform_indices = @transform_6, window_bounds = array<i64: 1, 32>}, {pipeline_mode = #tpu.pipeline_mode<synchronous>, transform_indices = @transform_7, window_bounds = array<i64: 1, 32>}, {pipeline_mode = #tpu.pipeline_mode<synchronous>, transform_indices = @transform_8, window_bounds = array<i64: 1, 32>}, {pipeline_mode = #tpu.pipeline_mode<synchronous>, transform_indices = @transform_9, window_bounds = array<i64: 32, 32>}, {pipeline_mode = #tpu.pipeline_mode<synchronous>, transform_indices = @transform_10, window_bounds = array<i64: 1, 32>}, {pipeline_mode = #tpu.pipeline_mode<synchronous>, transform_indices = @transform_11, window_bounds = array<i64: 1, 32>}, {pipeline_mode = #tpu.pipeline_mode<synchronous>, transform_indices = @transform_12, window_bounds = array<i64: 1, 32>}, {pipeline_mode = #tpu.pipeline_mode<synchronous>, transform_indices = @transform_13, window_bounds = array<i64: 32, 128>}, {pipeline_mode = #tpu.pipeline_mode<synchronous>, transform_indices = @transform_14, window_bounds = array<i64: 1, 128>}, {pipeline_mode = #tpu.pipeline_mode<synchronous>, transform_indices = @transform_15, window_bounds = array<i64: 128, 32>}, {pipeline_mode = #tpu.pipeline_mode<synchronous>, transform_indices = @transform_16, window_bounds = array<i64: 1, 32>}, {pipeline_mode = #tpu.pipeline_mode<synchronous>, transform_indices = @transform_17, window_bounds = array<i64: 1, 32>}, {pipeline_mode = #tpu.pipeline_mode<synchronous>, transform_indices = @transform_18, window_bounds = array<i64: 1, 32>}, {transform_indices = @transform_19, window_bounds = array<i64: 8, 32>}]} {
    %c0 = arith.constant 0 : index
    %c0_0 = arith.constant 0 : index
    %0 = vector.load %arg1[%c0, %c0_0] : memref<8x32xf32, #tpu.memory_space<vmem>>, vector<8x32xf32>
    %c0_1 = arith.constant 0 : index
    %c0_2 = arith.constant 0 : index
    %1 = vector.load %arg2[%c0_1, %c0_2] : memref<8x32xf32, #tpu.memory_space<vmem>>, vector<8x32xf32>
    %c0_3 = arith.constant 0 : index
    %c0_4 = arith.constant 0 : index
    %2 = vector.load %arg3[%c0_3, %c0_4] : memref<8x32xf32, #tpu.memory_space<vmem>>, vector<8x32xf32>
    %c0_5 = arith.constant 0 : index
    %c0_6 = arith.constant 0 : index
    %3 = vector.load %arg4[%c0_5, %c0_6] : memref<32x32xf32, #tpu.memory_space<vmem>>, vector<32x32xf32>
    %cst = arith.constant dense<0.000000e+00> : vector<8x32xf32>
    %4 = tpu.matmul %0, %3, %cst {dimension_numbers = #tpu.dot_dimension_numbers<[1], [0], [0], [1], [0, 0, 1, 1], [], []>} : vector<8x32xf32>, vector<32x32xf32>, vector<8x32xf32> -> vector<8x32xf32>
    %c0_7 = arith.constant 0 : index
    %c0_8 = arith.constant 0 : index
    %5 = vector.load %arg7[%c0_7, %c0_8] : memref<1x32xf32, #tpu.memory_space<vmem>>, vector<1x32xf32>
    %6 = vector.broadcast %5 : vector<1x32xf32> to vector<8x32xf32>
    %7 = arith.addf %4, %6 : vector<8x32xf32>
    %c0_9 = arith.constant 0 : index
    %c0_10 = arith.constant 0 : index
    %8 = vector.load %arg5[%c0_9, %c0_10] : memref<32x32xf32, #tpu.memory_space<vmem>>, vector<32x32xf32>
    %cst_11 = arith.constant dense<0.000000e+00> : vector<8x32xf32>
    %9 = tpu.matmul %1, %8, %cst_11 {dimension_numbers = #tpu.dot_dimension_numbers<[1], [0], [0], [1], [0, 0, 1, 1], [], []>} : vector<8x32xf32>, vector<32x32xf32>, vector<8x32xf32> -> vector<8x32xf32>
    %c0_12 = arith.constant 0 : index
    %c0_13 = arith.constant 0 : index
    %10 = vector.load %arg8[%c0_12, %c0_13] : memref<1x32xf32, #tpu.memory_space<vmem>>, vector<1x32xf32>
    %11 = vector.broadcast %10 : vector<1x32xf32> to vector<8x32xf32>
    %12 = arith.addf %9, %11 : vector<8x32xf32>
    %c0_14 = arith.constant 0 : index
    %c0_15 = arith.constant 0 : index
    %13 = vector.load %arg6[%c0_14, %c0_15] : memref<32x32xf32, #tpu.memory_space<vmem>>, vector<32x32xf32>
    %cst_16 = arith.constant dense<0.000000e+00> : vector<8x32xf32>
    %14 = tpu.matmul %2, %13, %cst_16 {dimension_numbers = #tpu.dot_dimension_numbers<[1], [0], [0], [1], [0, 0, 1, 1], [], []>} : vector<8x32xf32>, vector<32x32xf32>, vector<8x32xf32> -> vector<8x32xf32>
    %c0_17 = arith.constant 0 : index
    %c0_18 = arith.constant 0 : index
    %15 = vector.load %arg9[%c0_17, %c0_18] : memref<1x32xf32, #tpu.memory_space<vmem>>, vector<1x32xf32>
    %16 = vector.broadcast %15 : vector<1x32xf32> to vector<8x32xf32>
    %17 = arith.addf %14, %16 : vector<8x32xf32>
    %cst_19 = arith.constant 0.353553385 : f32
    %18 = vector.broadcast %cst_19 : f32 to vector<8x32xf32>
    %19 = arith.mulf %7, %18 : vector<8x32xf32>
    %20 = vector.extract_strided_slice %19 {offsets = [0, 0], sizes = [8, 8], strides = [1, 1]} : vector<8x32xf32> to vector<8x8xf32>
    %21 = vector.shape_cast %20 : vector<8x8xf32> to vector<1x8x8xf32>
    %22 = vector.extract_strided_slice %19 {offsets = [0, 8], sizes = [8, 8], strides = [1, 1]} : vector<8x32xf32> to vector<8x8xf32>
    %23 = vector.shape_cast %22 : vector<8x8xf32> to vector<1x8x8xf32>
    %24 = vector.extract_strided_slice %19 {offsets = [0, 16], sizes = [8, 8], strides = [1, 1]} : vector<8x32xf32> to vector<8x8xf32>
    %25 = vector.shape_cast %24 : vector<8x8xf32> to vector<1x8x8xf32>
    %26 = vector.extract_strided_slice %19 {offsets = [0, 24], sizes = [8, 8], strides = [1, 1]} : vector<8x32xf32> to vector<8x8xf32>
    %27 = vector.shape_cast %26 : vector<8x8xf32> to vector<1x8x8xf32>
    %28 = tpu.concatenate %21, %23, %25, %27 in 0 : vector<1x8x8xf32>, vector<1x8x8xf32>, vector<1x8x8xf32>, vector<1x8x8xf32> -> vector<4x8x8xf32>
    %29 = vector.extract_strided_slice %12 {offsets = [0, 0], sizes = [8, 8], strides = [1, 1]} : vector<8x32xf32> to vector<8x8xf32>
    %30 = vector.shape_cast %29 : vector<8x8xf32> to vector<1x8x8xf32>
    %31 = vector.extract_strided_slice %12 {offsets = [0, 8], sizes = [8, 8], strides = [1, 1]} : vector<8x32xf32> to vector<8x8xf32>
    %32 = vector.shape_cast %31 : vector<8x8xf32> to vector<1x8x8xf32>
    %33 = vector.extract_strided_slice %12 {offsets = [0, 16], sizes = [8, 8], strides = [1, 1]} : vector<8x32xf32> to vector<8x8xf32>
    %34 = vector.shape_cast %33 : vector<8x8xf32> to vector<1x8x8xf32>
    %35 = vector.extract_strided_slice %12 {offsets = [0, 24], sizes = [8, 8], strides = [1, 1]} : vector<8x32xf32> to vector<8x8xf32>
    %36 = vector.shape_cast %35 : vector<8x8xf32> to vector<1x8x8xf32>
    %37 = tpu.concatenate %30, %32, %34, %36 in 0 : vector<1x8x8xf32>, vector<1x8x8xf32>, vector<1x8x8xf32>, vector<1x8x8xf32> -> vector<4x8x8xf32>
    %38 = vector.extract_strided_slice %17 {offsets = [0, 0], sizes = [8, 8], strides = [1, 1]} : vector<8x32xf32> to vector<8x8xf32>
    %39 = vector.shape_cast %38 : vector<8x8xf32> to vector<1x8x8xf32>
    %40 = vector.extract_strided_slice %17 {offsets = [0, 8], sizes = [8, 8], strides = [1, 1]} : vector<8x32xf32> to vector<8x8xf32>
    %41 = vector.shape_cast %40 : vector<8x8xf32> to vector<1x8x8xf32>
    %42 = vector.extract_strided_slice %17 {offsets = [0, 16], sizes = [8, 8], strides = [1, 1]} : vector<8x32xf32> to vector<8x8xf32>
    %43 = vector.shape_cast %42 : vector<8x8xf32> to vector<1x8x8xf32>
    %44 = vector.extract_strided_slice %17 {offsets = [0, 24], sizes = [8, 8], strides = [1, 1]} : vector<8x32xf32> to vector<8x8xf32>
    %45 = vector.shape_cast %44 : vector<8x8xf32> to vector<1x8x8xf32>
    %46 = tpu.concatenate %39, %41, %43, %45 in 0 : vector<1x8x8xf32>, vector<1x8x8xf32>, vector<1x8x8xf32>, vector<1x8x8xf32> -> vector<4x8x8xf32>
    "tpu.trace_start"() <{level = 10 : i32, message = "bqd,bkd->bqk"}> : () -> ()
    %cst_20 = arith.constant dense<0.000000e+00> : vector<4x8x8xf32>
    %47 = tpu.matmul %28, %37, %cst_20 {dimension_numbers = #tpu.dot_dimension_numbers<[2], [2], [1], [1], [0, 0, 0, 1, 1, 1], [0], [0]>} : vector<4x8x8xf32>, vector<4x8x8xf32>, vector<4x8x8xf32> -> vector<4x8x8xf32>
    "tpu.trace_stop"() : () -> ()
    %cst_21 = arith.constant dense<0xFF800000> : vector<4x8xf32>
    %48 = vector.multi_reduction <maximumf>, %47, %cst_21 [2] : vector<4x8x8xf32> to vector<4x8xf32>
    %49 = vector.shape_cast %48 : vector<4x8xf32> to vector<4x8x1xf32>
    %50 = vector.broadcast %49 : vector<4x8x1xf32> to vector<4x8x8xf32>
    %51 = arith.subf %47, %50 : vector<4x8x8xf32>
    %52 = math.exp %51 : vector<4x8x8xf32>
    %cst_22 = arith.constant dense<0.000000e+00> : vector<4x8xf32>
    %53 = vector.multi_reduction <add>, %52, %cst_22 [2] : vector<4x8x8xf32> to vector<4x8xf32>
    %54 = vector.shape_cast %53 : vector<4x8xf32> to vector<4x8x1xf32>
    %55 = tpu.reciprocal %54 {approx = true} : vector<4x8x1xf32> -> vector<4x8x1xf32>
    %56 = vector.broadcast %55 : vector<4x8x1xf32> to vector<4x8x8xf32>
    %57 = arith.mulf %52, %56 : vector<4x8x8xf32>
    "tpu.trace_start"() <{level = 10 : i32, message = "bqk,bkd->bqd"}> : () -> ()
    %cst_23 = arith.constant dense<0.000000e+00> : vector<4x8x8xf32>
    %58 = tpu.matmul %57, %46, %cst_23 {dimension_numbers = #tpu.dot_dimension_numbers<[2], [1], [1], [2], [0, 0, 0, 1, 1, 2], [0], [0]>} : vector<4x8x8xf32>, vector<4x8x8xf32>, vector<4x8x8xf32> -> vector<4x8x8xf32>
    "tpu.trace_stop"() : () -> ()
    %59 = vector.extract_strided_slice %58 {offsets = [0, 0, 0], sizes = [1, 8, 8], strides = [1, 1, 1]} : vector<4x8x8xf32> to vector<1x8x8xf32>
    %60 = vector.shape_cast %59 : vector<1x8x8xf32> to vector<8x8xf32>
    %61 = vector.extract_strided_slice %58 {offsets = [1, 0, 0], sizes = [1, 8, 8], strides = [1, 1, 1]} : vector<4x8x8xf32> to vector<1x8x8xf32>
    %62 = vector.shape_cast %61 : vector<1x8x8xf32> to vector<8x8xf32>
    %63 = vector.extract_strided_slice %58 {offsets = [2, 0, 0], sizes = [1, 8, 8], strides = [1, 1, 1]} : vector<4x8x8xf32> to vector<1x8x8xf32>
    %64 = vector.shape_cast %63 : vector<1x8x8xf32> to vector<8x8xf32>
    %65 = vector.extract_strided_slice %58 {offsets = [3, 0, 0], sizes = [1, 8, 8], strides = [1, 1, 1]} : vector<4x8x8xf32> to vector<1x8x8xf32>
    %66 = vector.shape_cast %65 : vector<1x8x8xf32> to vector<8x8xf32>
    %67 = tpu.concatenate %60, %62, %64, %66 in 1 : vector<8x8xf32>, vector<8x8xf32>, vector<8x8xf32>, vector<8x8xf32> -> vector<8x32xf32>
    %c0_24 = arith.constant 0 : index
    %c0_25 = arith.constant 0 : index
    %68 = vector.load %arg10[%c0_24, %c0_25] : memref<32x32xf32, #tpu.memory_space<vmem>>, vector<32x32xf32>
    %cst_26 = arith.constant dense<0.000000e+00> : vector<8x32xf32>
    %69 = tpu.matmul %67, %68, %cst_26 {dimension_numbers = #tpu.dot_dimension_numbers<[1], [0], [0], [1], [0, 0, 1, 1], [], []>} : vector<8x32xf32>, vector<32x32xf32>, vector<8x32xf32> -> vector<8x32xf32>
    %c0_27 = arith.constant 0 : index
    %c0_28 = arith.constant 0 : index
    %70 = vector.load %arg11[%c0_27, %c0_28] : memref<1x32xf32, #tpu.memory_space<vmem>>, vector<1x32xf32>
    %71 = vector.broadcast %70 : vector<1x32xf32> to vector<8x32xf32>
    %72 = arith.addf %69, %71 : vector<8x32xf32>
    %73 = arith.addf %72, %0 : vector<8x32xf32>
    %c0_29 = arith.constant 0 : index
    %c0_30 = arith.constant 0 : index
    %74 = vector.load %arg12[%c0_29, %c0_30] : memref<1x32xf32, #tpu.memory_space<vmem>>, vector<1x32xf32>
    %c0_31 = arith.constant 0 : index
    %c0_32 = arith.constant 0 : index
    %75 = vector.load %arg13[%c0_31, %c0_32] : memref<1x32xf32, #tpu.memory_space<vmem>>, vector<1x32xf32>
    %cst_33 = arith.constant dense<0.000000e+00> : vector<8xf32>
    %76 = vector.multi_reduction <add>, %73, %cst_33 [1] : vector<8x32xf32> to vector<8xf32>
    %77 = vector.shape_cast %76 : vector<8xf32> to vector<8x1xf32>
    %cst_34 = arith.constant 3.200000e+01 : f32
    %78 = vector.broadcast %cst_34 : f32 to vector<8x1xf32>
    %79 = arith.divf %77, %78 : vector<8x1xf32>
    %80 = vector.broadcast %79 : vector<8x1xf32> to vector<8x32xf32>
    %81 = arith.subf %73, %80 : vector<8x32xf32>
    %82 = arith.mulf %81, %81 : vector<8x32xf32>
    %cst_35 = arith.constant dense<0.000000e+00> : vector<8xf32>
    %83 = vector.multi_reduction <add>, %82, %cst_35 [1] : vector<8x32xf32> to vector<8xf32>
    %84 = vector.shape_cast %83 : vector<8xf32> to vector<8x1xf32>
    %cst_36 = arith.constant 3.200000e+01 : f32
    %85 = vector.broadcast %cst_36 : f32 to vector<8x1xf32>
    %86 = arith.divf %84, %85 : vector<8x1xf32>
    %cst_37 = arith.constant 9.99999974E-6 : f32
    %87 = vector.broadcast %cst_37 : f32 to vector<8x1xf32>
    %88 = arith.addf %86, %87 : vector<8x1xf32>
    %89 = math.rsqrt %88 : vector<8x1xf32>
    %90 = vector.broadcast %89 : vector<8x1xf32> to vector<8x32xf32>
    %91 = arith.mulf %81, %90 : vector<8x32xf32>
    %92 = vector.broadcast %74 : vector<1x32xf32> to vector<8x32xf32>
    %93 = arith.mulf %91, %92 : vector<8x32xf32>
    %94 = vector.broadcast %75 : vector<1x32xf32> to vector<8x32xf32>
    %95 = arith.addf %93, %94 : vector<8x32xf32>
    %c0_38 = arith.constant 0 : index
    %c0_39 = arith.constant 0 : index
    %96 = vector.load %arg14[%c0_38, %c0_39] : memref<32x128xf32, #tpu.memory_space<vmem>>, vector<32x128xf32>
    %cst_40 = arith.constant dense<0.000000e+00> : vector<8x128xf32>
    %97 = tpu.matmul %95, %96, %cst_40 {dimension_numbers = #tpu.dot_dimension_numbers<[1], [0], [0], [1], [0, 0, 1, 1], [], []>} : vector<8x32xf32>, vector<32x128xf32>, vector<8x128xf32> -> vector<8x128xf32>
    %c0_41 = arith.constant 0 : index
    %c0_42 = arith.constant 0 : index
    %98 = vector.load %arg15[%c0_41, %c0_42] : memref<1x128xf32, #tpu.memory_space<vmem>>, vector<1x128xf32>
    %99 = vector.broadcast %98 : vector<1x128xf32> to vector<8x128xf32>
    %100 = arith.addf %97, %99 : vector<8x128xf32>
    %cst_43 = arith.constant 0.000000e+00 : f32
    %101 = vector.broadcast %cst_43 : f32 to vector<8x128xf32>
    %102 = arith.maximumf %100, %101 : vector<8x128xf32>
    %c0_44 = arith.constant 0 : index
    %c0_45 = arith.constant 0 : index
    %103 = vector.load %arg16[%c0_44, %c0_45] : memref<128x32xf32, #tpu.memory_space<vmem>>, vector<128x32xf32>
    %cst_46 = arith.constant dense<0.000000e+00> : vector<8x32xf32>
    %104 = tpu.matmul %102, %103, %cst_46 {dimension_numbers = #tpu.dot_dimension_numbers<[1], [0], [0], [1], [0, 0, 1, 1], [], []>} : vector<8x128xf32>, vector<128x32xf32>, vector<8x32xf32> -> vector<8x32xf32>
    %c0_47 = arith.constant 0 : index
    %c0_48 = arith.constant 0 : index
    %105 = vector.load %arg17[%c0_47, %c0_48] : memref<1x32xf32, #tpu.memory_space<vmem>>, vector<1x32xf32>
    %106 = vector.broadcast %105 : vector<1x32xf32> to vector<8x32xf32>
    %107 = arith.addf %104, %106 : vector<8x32xf32>
    %108 = arith.addf %107, %95 : vector<8x32xf32>
    %c0_49 = arith.constant 0 : index
    %c0_50 = arith.constant 0 : index
    %109 = vector.load %arg18[%c0_49, %c0_50] : memref<1x32xf32, #tpu.memory_space<vmem>>, vector<1x32xf32>
    %c0_51 = arith.constant 0 : index
    %c0_52 = arith.constant 0 : index
    %110 = vector.load %arg19[%c0_51, %c0_52] : memref<1x32xf32, #tpu.memory_space<vmem>>, vector<1x32xf32>
    %cst_53 = arith.constant dense<0.000000e+00> : vector<8xf32>
    %111 = vector.multi_reduction <add>, %108, %cst_53 [1] : vector<8x32xf32> to vector<8xf32>
    %112 = vector.shape_cast %111 : vector<8xf32> to vector<8x1xf32>
    %cst_54 = arith.constant 3.200000e+01 : f32
    %113 = vector.broadcast %cst_54 : f32 to vector<8x1xf32>
    %114 = arith.divf %112, %113 : vector<8x1xf32>
    %115 = vector.broadcast %114 : vector<8x1xf32> to vector<8x32xf32>
    %116 = arith.subf %108, %115 : vector<8x32xf32>
    %117 = arith.mulf %116, %116 : vector<8x32xf32>
    %cst_55 = arith.constant dense<0.000000e+00> : vector<8xf32>
    %118 = vector.multi_reduction <add>, %117, %cst_55 [1] : vector<8x32xf32> to vector<8xf32>
    %119 = vector.shape_cast %118 : vector<8xf32> to vector<8x1xf32>
    %cst_56 = arith.constant 3.200000e+01 : f32
    %120 = vector.broadcast %cst_56 : f32 to vector<8x1xf32>
    %121 = arith.divf %119, %120 : vector<8x1xf32>
    %cst_57 = arith.constant 9.99999974E-6 : f32
    %122 = vector.broadcast %cst_57 : f32 to vector<8x1xf32>
    %123 = arith.addf %121, %122 : vector<8x1xf32>
    %124 = math.rsqrt %123 : vector<8x1xf32>
    %125 = vector.broadcast %124 : vector<8x1xf32> to vector<8x32xf32>
    %126 = arith.mulf %116, %125 : vector<8x32xf32>
    %127 = vector.broadcast %109 : vector<1x32xf32> to vector<8x32xf32>
    %128 = arith.mulf %126, %127 : vector<8x32xf32>
    %129 = vector.broadcast %110 : vector<1x32xf32> to vector<8x32xf32>
    %130 = arith.addf %128, %129 : vector<8x32xf32>
    %c0_58 = arith.constant 0 : index
    %c0_59 = arith.constant 0 : index
    %131 = vector.load %arg20[%c0_58, %c0_59] : memref<8x32xf32, #tpu.memory_space<vmem>>, vector<8x32xf32>
    tpu.vector_store %arg20[%c0_58, %c0_59], %130 {strides = array<i32>} : memref<8x32xf32, #tpu.memory_space<vmem>>, vector<8x32xf32>,
    return
  }
  func.func @transform_0(%arg0: i32) -> (i32, i32) {
    %c0_i32 = arith.constant 0 : i32
    %c0_i32_0 = arith.constant 0 : i32
    return %arg0, %c0_i32 : i32, i32
  }
  func.func @transform_1(%arg0: i32) -> (i32, i32) {
    %c0_i32 = arith.constant 0 : i32
    %c0_i32_0 = arith.constant 0 : i32
    return %arg0, %c0_i32 : i32, i32
  }
  func.func @transform_2(%arg0: i32) -> (i32, i32) {
    %c0_i32 = arith.constant 0 : i32
    %c0_i32_0 = arith.constant 0 : i32
    return %arg0, %c0_i32 : i32, i32
  }
  func.func @transform_3(%arg0: i32) -> (i32, i32) {
    %c0_i32 = arith.constant 0 : i32
    %c0_i32_0 = arith.constant 0 : i32
    %c0_i32_1 = arith.constant 0 : i32
    return %c0_i32, %c0_i32_0 : i32, i32
  }
  func.func @transform_4(%arg0: i32) -> (i32, i32) {
    %c0_i32 = arith.constant 0 : i32
    %c0_i32_0 = arith.constant 0 : i32
    %c0_i32_1 = arith.constant 0 : i32
    return %c0_i32, %c0_i32_0 : i32, i32
  }
  func.func @transform_5(%arg0: i32) -> (i32, i32) {
    %c0_i32 = arith.constant 0 : i32
    %c0_i32_0 = arith.constant 0 : i32
    %c0_i32_1 = arith.constant 0 : i32
    return %c0_i32, %c0_i32_0 : i32, i32
  }
  func.func @transform_6(%arg0: i32) -> (i32, i32) {
    %c0_i32 = arith.constant 0 : i32
    %c0_i32_0 = arith.constant 0 : i32
    %c0_i32_1 = arith.constant 0 : i32
    return %c0_i32, %c0_i32_0 : i32, i32
  }
  func.func @transform_7(%arg0: i32) -> (i32, i32) {
    %c0_i32 = arith.constant 0 : i32
    %c0_i32_0 = arith.constant 0 : i32
    %c0_i32_1 = arith.constant 0 : i32
    return %c0_i32, %c0_i32_0 : i32, i32
  }
  func.func @transform_8(%arg0: i32) -> (i32, i32) {
    %c0_i32 = arith.constant 0 : i32
    %c0_i32_0 = arith.constant 0 : i32
    %c0_i32_1 = arith.constant 0 : i32
    return %c0_i32, %c0_i32_0 : i32, i32
  }
  func.func @transform_9(%arg0: i32) -> (i32, i32) {
    %c0_i32 = arith.constant 0 : i32
    %c0_i32_0 = arith.constant 0 : i32
    %c0_i32_1 = arith.constant 0 : i32
    return %c0_i32, %c0_i32_0 : i32, i32
  }
  func.func @transform_10(%arg0: i32) -> (i32, i32) {
    %c0_i32 = arith.constant 0 : i32
    %c0_i32_0 = arith.constant 0 : i32
    %c0_i32_1 = arith.constant 0 : i32
    return %c0_i32, %c0_i32_0 : i32, i32
  }
  func.func @transform_11(%arg0: i32) -> (i32, i32) {
    %c0_i32 = arith.constant 0 : i32
    %c0_i32_0 = arith.constant 0 : i32
    %c0_i32_1 = arith.constant 0 : i32
    return %c0_i32, %c0_i32_0 : i32, i32
  }
  func.func @transform_12(%arg0: i32) -> (i32, i32) {
    %c0_i32 = arith.constant 0 : i32
    %c0_i32_0 = arith.constant 0 : i32
    %c0_i32_1 = arith.constant 0 : i32
    return %c0_i32, %c0_i32_0 : i32, i32
  }
  func.func @transform_13(%arg0: i32) -> (i32, i32) {
    %c0_i32 = arith.constant 0 : i32
    %c0_i32_0 = arith.constant 0 : i32
    %c0_i32_1 = arith.constant 0 : i32
    return %c0_i32, %c0_i32_0 : i32, i32
  }
  func.func @transform_14(%arg0: i32) -> (i32, i32) {
    %c0_i32 = arith.constant 0 : i32
    %c0_i32_0 = arith.constant 0 : i32
    %c0_i32_1 = arith.constant 0 : i32
    return %c0_i32, %c0_i32_0 : i32, i32
  }
  func.func @transform_15(%arg0: i32) -> (i32, i32) {
    %c0_i32 = arith.constant 0 : i32
    %c0_i32_0 = arith.constant 0 : i32
    %c0_i32_1 = arith.constant 0 : i32
    return %c0_i32, %c0_i32_0 : i32, i32
  }
  func.func @transform_16(%arg0: i32) -> (i32, i32) {
    %c0_i32 = arith.constant 0 : i32
    %c0_i32_0 = arith.constant 0 : i32
    %c0_i32_1 = arith.constant 0 : i32
    return %c0_i32, %c0_i32_0 : i32, i32
  }
  func.func @transform_17(%arg0: i32) -> (i32, i32) {
    %c0_i32 = arith.constant 0 : i32
    %c0_i32_0 = arith.constant 0 : i32
    %c0_i32_1 = arith.constant 0 : i32
    return %c0_i32, %c0_i32_0 : i32, i32
  }
  func.func @transform_18(%arg0: i32) -> (i32, i32) {
    %c0_i32 = arith.constant 0 : i32
    %c0_i32_0 = arith.constant 0 : i32
    %c0_i32_1 = arith.constant 0 : i32
    return %c0_i32, %c0_i32_0 : i32, i32
  }
  func.func @transform_19(%arg0: i32) -> (i32, i32) {
    %c0_i32 = arith.constant 0 : i32
    %c0_i32_0 = arith.constant 0 : i32
    return %arg0, %c0_i32 : i32, i32
  }
}

</mosaic_0001>

<bundles_post_ra>
// kernel: tpu_custom_call.1
= control target key start
LH: loop header
LB: loop body
LE: loop exit
PB: predicated region body
PF: predicated region fallthrough
CT: control target
= control target key end

     0   :  { %s3117_s0 = inlined_call_operand.hbm [shape: f32[16,32], index: 0, kind: input, shape index: {}]   ;;  %s3118_s1 = inlined_call_operand.hbm [shape: f32[16,32], index: 1, kind: input, shape index: {}]   ;;  %s3119_s2 = inlined_call_operand.hbm [shape: f32[16,32], index: 2, kind: input, shape index: {}]   ;;  %s3120_s3 = inlined_call_operand.vmem [shape: f32[32,32], index: 3, kind: input, shape index: {}]   ;;  %s3121_s4 = inlined_call_operand.vmem [shape: f32[32,32], index: 4, kind: input, shape index: {}]   ;;  %s3122_s5 = inlined_call_operand.vmem [shape: f32[32,32], index: 5, kind: input, shape index: {}]   ;;  %s3123_s6 = inlined_call_operand.vmem [shape: f32[1,32], index: 6, kind: input, shape index: {}]   ;;  %s3124_s7 = inlined_call_operand.vmem [shape: f32[1,32], index: 7, kind: input, shape index: {}]   ;;  %s3125_s8 = inlined_call_operand.vmem [shape: f32[1,32], index: 8, kind: input, shape index: {}]   ;;  %s3126_s9 = inlined_call_operand.vmem [shape: f32[32,32], index: 9, kind: input, shape index: {}]   ;;  %s3127_s10 = inlined_call_operand.vmem [shape: f32[1,32], index: 10, kind: input, shape index: {}]   ;;  %s3128_s11 = inlined_call_operand.vmem [shape: f32[1,32], index: 11, kind: input, shape index: {}]   ;;  %s3129_s12 = inlined_call_operand.vmem [shape: f32[1,32], index: 12, kind: input, shape index: {}]   ;;  %s3130_s13 = inlined_call_operand.vmem [shape: f32[32,128], index: 13, kind: input, shape index: {}]   ;;  %s3131_s14 = inlined_call_operand.vmem [shape: f32[1,128], index: 14, kind: input, shape index: {}]   ;;  %s3132_s15 = inlined_call_operand.vmem [shape: f32[128,32], index: 15, kind: input, shape index: {}]   ;;  %s3133_s16 = inlined_call_operand.vmem [shape: f32[1,32], index: 16, kind: input, shape index: {}]   ;;  %s3134_s17 = inlined_call_operand.vmem [shape: f32[1,32], index: 17, kind: input, shape index: {}]   ;;  %s3135_s18 = inlined_call_operand.vmem [shape: f32[1,32], index: 18, kind: input, shape index: {}]   ;;  %s3136_s19 = inlined_call_operand.hbm [shape: f32[16,32], index: 19, kind: output, shape index: {}]  }
   0x1   :  { %3157 = sst [smem:[#allocation19_spill]] %s3117_s0 }
   0x2   :  { %3158 = sst [smem:[#allocation20_spill]] %s3118_s1 }
   0x3   :  { %3159 = sst [smem:[#allocation21_spill]] %s3119_s2 }
   0x4   :  { %3160 = sst [smem:[#allocation22_spill]] %s3120_s3 }
   0x5   :  { %3161 = sst [smem:[#allocation23_spill]] %s3128_s11 }
   0x6   :  { %3162 = sst [smem:[#allocation24_spill]] %s3129_s12 }
   0x7   :  { %3163 = sst [smem:[#allocation25_spill]] %s3130_s13 }
   0x8   :  { %3164 = sst [smem:[#allocation26_spill]] %s3131_s14 }
   0x9   :  { %3165 = sst [smem:[#allocation27_spill]] %s3132_s15 }
   0xa   :  { %3166 = sst [smem:[#allocation28_spill]] %s3133_s16 }
   0xb   :  { %3167 = sst [smem:[#allocation29_spill]] %s3134_s17 }
   0xc   :  { %3168 = sst [smem:[#allocation30_spill]] %s3135_s18 }
   0xd   :  { %3169 = sst [smem:[#allocation31_spill]] %s3136_s19 }
   0xe   :  { %24 = vsyncpa [#allocation3], 0 }
   0xf   :  { %26 = vsyncpa [#allocation3 + $0x1], 0 }
  0x10   :  { %27 = vsyncpa [#allocation6], 0 }
  0x11   :  { %29 = vsyncpa [#allocation6 + $0x1], 0 }
  0x12   :  { %30 = vsyncpa [#allocation4], 0 }
  0x13   :  { %32 = vsyncpa [#allocation4 + $0x1], 0  ;;  %s2654_s0 = smov 0   ;;  %s2656_s30 = smov 0  }
  0x14   :  { %s2658_s20 = smov 0   ;;  %s2660_s21 = smov 0  }
  0x15 LB: > { %3170 = sst [smem:[#allocation12_spill]] %s2528_s0  ;;  %s2675_s1 = sadd.s32 4294967295, %s2540_s21   ;;  %s2540_s21 = sphi %s2660_s21, %s3208_s21   ;;  %s2536_s20 = sphi %s2658_s20, %s3210_s20   ;;  %s2532_s30 = sphi %s2656_s30, %s3212_s30   ;;  %s2528_s0 = sphi %s2654_s0, %s3211_s0  }
  0x16   : > { %3171 = sst [smem:[#allocation13_spill]] %s2536_s20  ;;  %s2071_s22 = sadd.s32 4294967294, %s2540_s21  }
  0x17   : > { %3172 = sst [smem:[#allocation14_spill]] %s2540_s21  ;;  %s2679_s2 = sadd.s32 1, %s2540_s21  }
  0x18   : > { %3173 = sst [smem:[#allocation15_spill]] %s2679_s2  ;;  %s45_s23 = sadd.s32 1, %s2536_s20 }
  0x19   : > { %s42_s24 = ssub.s32 %s2540_s21, %s2679_s2  ;;  %p52_p0 = scmp.ne.s32.totalorder %s2536_s20, %s2532_s30 }
  0x1a   : > { %p43_p1 = scmp.eq.s32.totalorder %s42_s24, 0  ;;  %p53_p2 = scmp.eq.s32.totalorder %s2540_s21, 0 }
  0x1b   : > { %p58_p3 = scmp.ne.s32.totalorder %s2532_s30, %s2528_s0  ;;  %p59_p4 = scmp.eq.s32.totalorder %s2675_s1, 0 }
  0x1c   : > { %s2691_s25 = scalar_select %p43_p1, %s2536_s20, %s45_s23  }
  0x1d   : > { %p54_p5 = por %p53_p2, %p52_p0  ;;  %p2693_p6 = por %p59_p4, %p58_p3 }
  0x1e   : > { %3174 = sst [smem:[#allocation16_spill]] %s2691_s25  ;;  %p470_p7 = scmp.eq.s32.totalorder %s2675_s1, 1 }
  0x1f   : > { %s3175_s3 = scalar_select %p2693_p6, 1, 0 }
  0x20   : > { %p476_p8 = scmp.eq.s32.totalorder %s2071_s22, 1  ;;  %p2326_p10 = scmp.lt.s32.totalorder %s2540_s21, 2 }
  0x21   : > { %p2700_p11 = por %p470_p7, %p52_p0  ;;  %s3146_s28 = sand.u32 1, %s2536_s20  }
  0x22   : > { %p2704_p12 = por %p476_p8, %p58_p3  ;;  %s2710_s29 = sshll.u32 %s2540_s21, 7 }
  0x23   : > { %s3176_s26 = scalar_select %p2700_p11, 1, 0 }
  0x24   : > { %s3178_s27 = scalar_select %p2704_p12, 1, 0 }
  0x25   : > { %3177 = sst [smem:[#allocation17_spill]] %s3176_s26  ;;  %s2714_s23 = sshll.u32 %s3146_s28, 3 }
  0x26   : > { %3179 = sst [smem:[#allocation18_spill]] %s3178_s27  ;;  %p2716_p13 = pnand %p2326_p10, %p54_p5 }
  0x27   : > { %s562_s24 = sand.u32 1, %s2540_s21   ;;  %s3181_s0 = sld [smem:[#allocation20_spill]] }
  0x28   : > { %s566_s27 = scalar_lea.vmem [#allocation5], %s2714_s23  ;;  %s2729_s28 = scalar_lea.sflag [#allocation6], %s562_s24 }
  0x29   : > { %s573_s17 = sshll.u32 %s566_s27, 4  ;;  %p2735_p2 = pneg %p2716_p13  ;;  %s574_s17 = int_to_ptr.vmem [resolvable:$true] %s573_s17 }
  0x2d   : > { %s3182_s19 = smov %s3181_s0  ;;  %s2725_s18 = scalar_lea.hbm %s3181_s0, %s2710_s29 }
  0x2e   : > { %s2388_s26 = scalar_lea.hbm %s2725_s18, 128  ;;  %s2393_s25 = scalar_lea.hbm %s3182_s19, 256 }
  0x2f   : > { %p2389_p1 = scmp.ne.s32.totalorder %s2725_s18, %s2388_s26  ;;  %p2394_p5 = scmp.lt.s32.totalorder %s2725_s18, %s3182_s19 }
  0x30   : > { %p2395_p7 = scmp.lt.s32.totalorder %s2393_s25, %s2388_s26 }
  0x31   : > { %p2391_p3 = pnand %p2735_p2, %p2389_p1 }
  0x32   : > { %p2396_p8 = por %p2395_p7, %p2394_p5 }
  0x33   : > { %p2392_p4 = pneg %p2391_p3 }
  0x35   : > { %p2397_p10 = pnand %p2396_p8, %p2392_p4 }
  0x37   : > { %2400 = shalt.err (!%p2397_p10)
}
  0x38   : > { %s2401_s24 = scalar_lea.vmem %s574_s17, 128  ;;  %s2542_s12 = smov [#allocation5]  }
  0x39   : > { %p2402_p9 = scmp.ne.s32.totalorder %s574_s17, %s2401_s24  ;;  %s2406_s11 = sshll.u32 %s2542_s12, 4  ;;  %s2407_s11 = int_to_ptr.vmem [resolvable:$false] %s2406_s11 }
  0x3a   : > { %s2408_s15 = scalar_lea.vmem %s2407_s11, 256  ;;  %p2409_p1 = scmp.lt.s32.totalorder %s574_s17, %s2407_s11 }
  0x3b   : > { %p2404_p0 = pnand %p2402_p9, %p2735_p2  ;;  %p2410_p3 = scmp.lt.s32.totalorder %s2408_s15, %s2401_s24 }
  0x3d   : > { %p2405_p12 = pneg %p2404_p0  ;;  %p2411_p11 = por %p2410_p3, %p2409_p1 }
  0x3f   : > { %p2412_p6 = pnand %p2411_p11, %p2405_p12 }
  0x41   : > { %2415 = shalt.err (!%p2412_p6)
}
  0x42   : > { %2318 = dma.hbm_to_vmem [thread:$0]  (!%p2716_p13), %s2725_s18, 128, %s574_s17, %s2729_s28  }
  0x43   : > { %p596_p9 = scmp.lt.s32.totalorder %s2540_s21, 3  ;;  %s3184_s26 = sld [smem:[#allocation19_spill]] }
  0x44   : > { %p3185_p0 = scmp.ge.s32.totalorder %s2540_s21, 1  ;;  %s548_s0 = scalar_lea.vmem [#allocation2], %s2714_s23 }
  0x45   : > { %s555_s2 = sshll.u32 %s548_s0, 4  ;;  %s3187_s25 = sand.u32 1, %s2536_s20   ;;  %s556_s2 = int_to_ptr.vmem [resolvable:$true] %s555_s2 }
  0x46   : > { %p2763_p6 = pnand %p3185_p0, %p596_p9  ;;  %s545_s27 = scalar_lea.sflag [#allocation3], %s3187_s25 }
  0x48   : > { %s3186_s15 = scalar_select %p2763_p6, 1, 0 }
  0x49   : > { %s2759_s11 = scalar_lea.hbm %s3184_s26, %s2710_s29  ;;  %s2421_s12 = scalar_lea.hbm %s3184_s26, 256 }
  0x4a   : > { %s2416_s17 = scalar_lea.hbm %s2759_s11, 128  ;;  %p2422_p5 = scmp.lt.s32.totalorder %s2759_s11, %s3184_s26 }
  0x4b   : > { %p2417_p11 = scmp.ne.s32.totalorder %s2759_s11, %s2416_s17  ;;  %p2423_p7 = scmp.lt.s32.totalorder %s2421_s12, %s2416_s17 }
  0x4d   : > { %p2419_p12 = pnand %p2417_p11, %p2735_p2  ;;  %p2424_p8 = por %p2423_p7, %p2422_p5 }
  0x4f   : > { %p2420_p4 = pneg %p2419_p12 }
  0x51   : > { %p2425_p10 = pnand %p2424_p8, %p2420_p4 }
  0x53   : > { %2428 = shalt.err (!%p2425_p10)
}
  0x54   : > { %s2429_s0 = scalar_lea.vmem %s556_s2, 128  ;;  %s2543_s25 = smov [#allocation2]  }
  0x55   : > { %p2430_p1 = scmp.ne.s32.totalorder %s556_s2, %s2429_s0  ;;  %s2434_s20 = sshll.u32 %s2543_s25, 4  ;;  %s2435_s20 = int_to_ptr.vmem [resolvable:$false] %s2434_s20 }
  0x56   : > { %s2436_s21 = scalar_lea.vmem %s2435_s20, 256  ;;  %p2437_p0 = scmp.lt.s32.totalorder %s556_s2, %s2435_s20 }
  0x57   : > { %p2432_p3 = pnand %p2430_p1, %p2735_p2  ;;  %p2438_p11 = scmp.lt.s32.totalorder %s2436_s21, %s2429_s0 }
  0x59   : > { %p2433_p9 = pneg %p2432_p3  ;;  %p2439_p12 = por %p2438_p11, %p2437_p0 }
  0x5b   : > { %p2440_p6 = pnand %p2439_p12, %p2433_p9 }
  0x5d   : > { %2443 = shalt.err (!%p2440_p6)
}
  0x5e   : > { %2315 = dma.hbm_to_vmem [thread:$0]  (!%p2716_p13), %s2759_s11, 128, %s556_s2, %s545_s27  }
  0x5f   : > { %s3188_s18 = sld [smem:[#allocation21_spill]]  ;;  %s584_s12 = scalar_lea.vmem [#allocation7], %s2714_s23 }
  0x60   : > { %s591_s14 = sshll.u32 %s584_s12, 4  ;;  %s592_s14 = int_to_ptr.vmem [resolvable:$true] %s591_s14 }
  0x65   : > { %s589_s24 = scalar_lea.hbm %s3188_s18, %s2710_s29  ;;  %s2449_s0 = scalar_lea.hbm %s3188_s18, 256 }
  0x66   : > { %s2444_s25 = scalar_lea.hbm %s589_s24, 128  ;;  %p2450_p6 = scmp.lt.s32.totalorder %s589_s24, %s3188_s18 }
  0x67   : > { %p2445_p4 = scmp.ne.s32.totalorder %s589_s24, %s2444_s25  ;;  %p2451_p8 = scmp.lt.s32.totalorder %s2449_s0, %s2444_s25 }
  0x69   : > { %p2447_p5 = pnand %p2445_p4, %p2735_p2  ;;  %p2452_p10 = por %p2451_p8, %p2450_p6 }
  0x6b   : > { %p2448_p7 = pneg %p2447_p5 }
  0x6d   : > { %p2453_p1 = pnand %p2452_p10, %p2448_p7 }
  0x6f   : > { %2456 = shalt.err (!%p2453_p1)
}
  0x70   : > { %s2457_s29 = scalar_lea.vmem %s592_s14, 128  ;;  %s2544_s23 = smov [#allocation7]  }
  0x71   : > { %p2458_p3 = scmp.ne.s32.totalorder %s592_s14, %s2457_s29  ;;  %s2462_s11 = sshll.u32 %s2544_s23, 4  ;;  %s2463_s11 = int_to_ptr.vmem [resolvable:$false] %s2462_s11 }
  0x72   : > { %s2464_s2 = scalar_lea.vmem %s2463_s11, 256  ;;  %p2465_p11 = scmp.lt.s32.totalorder %s592_s14, %s2463_s11 }
  0x73   : > { %p2460_p9 = pnand %p2458_p3, %p2735_p2  ;;  %p2466_p12 = scmp.lt.s32.totalorder %s2464_s2, %s2457_s29 }
  0x75   : > { %p2461_p0 = pneg %p2460_p9  ;;  %p2467_p4 = por %p2466_p12, %p2465_p11 }
  0x77   : > { %p2468_p5 = pnand %p2467_p4, %p2461_p0 }
  0x79   : > { %2471 = shalt.err (!%p2468_p5)
}
  0x7a   : > { %2321 = dma.hbm_to_vmem [thread:$0]  (!%p2716_p13), %s589_s24, 128, %s592_s14, %s2729_s28  }
  0x7b   : > { %p3189_p7 = scmp.ne.s32.totalorder %s3186_s15, 0 }
  0x7c   : > { %s2807_s13 = sand.u32 (!%p3189_p7), 1, %s2532_s30   ;;  %p3190_p2 = scmp.ne.s32.totalorder (!%p3189_p7), %s3175_s3, 0 }
  0x7d   : > { %600 = sbr.rel (%p3189_p7) target bundleno = 2513 (0x9d1), region = 96  ;;  %s2810_s16 = sshll.u32 (!%p3189_p7), %s2807_s13, 3 }
  0x7e   : > { %s603_s26 = scalar_lea.sflag (!%p3189_p7), [#allocation3], %s2807_s13  ;;  %s606_s27 = scalar_lea.vmem (!%p3189_p7), [#allocation2], %s2810_s16 }
  0x82   : > { %2515 = dma.done.wait (%p3190_p2), %s603_s26, 128  }
  0x83   : > { %2517 = vsyncadd (%p3190_p2), %s603_s26, 4294967168  ;;  %s611_s28 = sand.u32 1, %s2675_s1   ;;  %s615_s15 = scalar_lea.vmem [#allocation5], %s2810_s16 }
  0x84   : > { %s612_s22 = scalar_lea.sflag [#allocation6], %s611_s28 }
  0x85   : > { %2519 = dma.done.wait (%p3190_p2), %s612_s22, 256  }
  0x86   : > { %2521 = vsyncadd (%p3190_p2), %s612_s22, 4294967040  ;;  %v2545_v0 = vmov 0.0   ;;  %vm2546_vm0 = vmmov 0   ;;  %s3191_s24 = sld [smem:[#allocation22_spill]]  ;;  %v2844_v5 = vld [vmem:[%s606_s27] sm:$0xff]  ;;  %vm703_vm1 = vcmask 261120  }
  0x87   : > { %2174 = vmatprep.subr.mxu1 %v2545_v0  ;;  %2182 = vmatprep.mubr.msk.f32.mxu1 %vm2546_vm0, %v2545_v0  ;;  %v780_v6 = vld [vmem:[%s3121_s4 + $0x18] sm:$0xff]  ;;  %v779_v7 = vld [vmem:[%s3121_s4 + $0x10] sm:$0xff]  ;;  %v778_v8 = vld [vmem:[%s3121_s4 + $0x8] sm:$0xff]  ;;  %s624_s20 = scalar_lea.vmem [#allocation7], %s2810_s16  ;;  %vm970_vm2 = vcmask 64512   ;;  %s2547_s11 = smov 112  }
  0x88   : > { %2217 = vmatprep.subr.mxu0 %v2545_v0  ;;  %2219 = vmatprep.mubr.msk.f32.mxu0 %vm2546_vm0, %v2545_v0  ;;  %v777_v9 = vld [vmem:[%s3121_s4] sm:$0xff]  ;;  %v690_v10 = vld [vmem:[%s615_s15] sm:$0xff]  ;;  %v862_v13 = vld [vmem:[%s3122_s5 + $0x8] sm:$0xff]  ;;  %s2548_s2 = smov 120   ;;  %s2549_s26 = smov 104   ;;  %vm1616_vm3 = vcmask 130048  }
  0x89   : > { %v864_v11 = vld [vmem:[%s3122_s5 + $0x18] sm:$0xff]  ;;  %v863_v12 = vld [vmem:[%s3122_s5 + $0x10] sm:$0xff]  ;;  %v861_v14 = vld [vmem:[%s3122_s5] sm:$0xff]  ;;  %s2551_s21 = smov 16   ;;  %s2552_s0 = smov 24   ;;  %vm1618_vm4 = vcmask 195584  }
  0x8a   : > { %v691_v15 = vld [vmem:[%s624_s20] sm:$0xff]  ;;  %s2550_s20 = smov 8   ;;  %s3193_s3 = sld [smem:[#allocation27_spill]] }
  0x8b   : > { %v2085_v18 = vld [vmem:[%s3123_s6] ss:$0 sm:$0xff]  ;;  %s3194_s22 = sld [smem:[#allocation23_spill]]  ;;  %s1945_s27 = scalar_lea.sflag [#allocation4], %s2807_s13 }
  0x8c   : > { %v695_v1 = vld [vmem:[%s3191_s24 + $0x18] sm:$0xff]  ;;  %v694_v2 = vld [vmem:[%s3191_s24 + $0x10] sm:$0xff]  ;;  %v693_v3 = vld [vmem:[%s3191_s24 + $0x8] sm:$0xff]  ;;  %s3195_s12 = sld [smem:[#allocation24_spill]]  ;;  %s2553_s19 = smov [#allocation8]  }
  0x8d   : > { %2175 = vmatpush3.msra.mxu1 %v695_v1  ;;  %v692_v4 = vld [vmem:[%s3191_s24] sm:$0xff]  ;;  %s3197_s28 = sld [smem:[#allocation28_spill]]  ;;  %s2476_s17 = sshll.u32 %s2553_s19, 4  ;;  %s2477_s17 = int_to_ptr.vmem [resolvable:$false] %s2476_s17 }
  0x8e   : > { %2176 = vmatprep.subr.mxu1 %v2545_v0  ;;  %v2087_v19 = vld [vmem:[%s3124_s7] ss:$0 sm:$0xff]  ;;  %s3200_s25 = sld [smem:[#allocation30_spill]] }
  0x8f   : > { %2177 = vmatpush3.msra.mxu1 %v694_v2  ;;  %v2089_v30 = vld [vmem:[%s3125_s8] ss:$0 sm:$0xff] }
  0x90   : > { %2178 = vmatprep.subr.mxu1 %v2545_v0 }
  0x91   : > { %2179 = vmatpush3.msra.mxu1 %v693_v3 }
  0x92   : > { %2180 = vmatprep.subr.mxu1 %v2545_v0 }
  0x93   : > { %2181 = vmatpush3.msra.mxu1 %v692_v4 }
  0x94   : > { %2183 = vmatmul.mubr.msk.f32.vlgmr.msra.gmra.mxu1 %vm703_vm1, %v2844_v5  ;;  %2185 = vmatprep.subr.mxu1 %v2545_v0 }
  0x95   : > { %2186 = vmatpush3.msra.mxu1 %v780_v6  ;;  %2193 = vmatprep.mubr.msk.f32.mxu1 %vm2546_vm0, %v2545_v0 }
  0x96   : > { %2187 = vmatprep.subr.mxu1 %v2545_v0 }
  0x97   : > { %2188 = vmatpush3.msra.mxu1 %v779_v7 }
  0x98   : > { %2189 = vmatprep.subr.mxu1 %v2545_v0 }
  0x99   : > { %2190 = vmatpush3.msra.mxu1 %v778_v8 }
  0x9a   : > { %2191 = vmatprep.subr.mxu1 %v2545_v0 }
  0x9b   : > { %2192 = vmatpush3.msra.mxu1 %v777_v9 }
  0x9c   : > { %2194 = vmatmul.mubr.msk.f32.vlgmr.msra.gmra.mxu1 %vm703_vm1, %v690_v10  ;;  %2196 = vmatprep.subr.mxu1 %v2545_v0 }
  0x9d   : > { %2204 = vmatprep.mubr.msk.f32.mxu1 %vm2546_vm0, %v2545_v0  ;;  %2197 = vmatpush3.msra.mxu1 %v864_v11 }
  0x9e   : > { %2198 = vmatprep.subr.mxu1 %v2545_v0 }
  0x9f   : > { %2199 = vmatpush3.msra.mxu1 %v863_v12 }
  0xa0   : > { %2200 = vmatprep.subr.mxu1 %v2545_v0 }
  0xa1   : > { %2201 = vmatpush3.msra.mxu1 %v862_v13 }
  0xa2   : > { %2202 = vmatprep.subr.mxu1 %v2545_v0 }
  0xa3   : > { %2203 = vmatpush3.msra.mxu1 %v861_v14 }
  0xa4   : > { %2205 = vmatmul.mubr.msk.f32.vlgmr.msra.gmra.mxu1 %vm703_vm1, %v691_v15  ;;  %2207 = vmatprep.subr.mxu1 %v2545_v0 }
  0xa5   : > { %2209 = vmatprep.mubr.msk.f32.mxu1 %vm2546_vm0, %v2545_v0 }
 0x154   : > { %v773_v16 = vpop.f32.mrf.mxu1 }
 0x155   : > { %v774_v21 = vadd.f32 %v2085_v18, %v773_v16 }
 0x156   : > { %v2184_v17 = vpop.f32.mrf.mxu1 }
 0x157   : > { %v945_v24 = vmul.f32 0.35355338, %v774_v21 }
 0x15c   : > { %v857_v20 = vpop.f32.mrf.mxu1 }
 0x15d   : > { %v858_v22 = vadd.f32 %v2087_v19, %v857_v20 }
 0x15e   : > { %v2195_v23 = vpop.f32.mrf.mxu1 }
 0x15f   : > { %956 = vrot.lane.b32.xlu1 %v858_v22, %s2547_s11  ;;  %954 = vrot.lane.b32.xlu0 %v858_v22, %s2548_s2  ;;  %v1622_v23 = vld [vmem:[%s3126_s9 + $0x10] sm:$0xff] }
 0x160   : > { %2208 = vmatpush3.xpose.msk.msra.mxu1 %vm970_vm2, %v858_v22 }
 0x161   : > { %2212 = vmatprep.subr.mxu1 %v2545_v0 }
 0x163   : > { %2210 = vmatmul.mubr.msk.f32.vlgmr.msra.gmra.mxu1 %vm970_vm2, %v945_v24  ;;  %958 = vrot.lane.b32.xlu1 %v858_v22, %s2549_s26  ;;  %v1623_v22 = vld [vmem:[%s3126_s9 + $0x18] sm:$0xff] }
 0x164   : > { %947 = vrot.lane.b32.xlu0 %v945_v24, %s2548_s2  ;;  %2214 = vmatprep.mubr.msk.f32.mxu1 %vm2546_vm0, %v2545_v0  ;;  %v941_v25 = vpop.f32.mrf.mxu1 }
 0x165   : > { %v942_v32 = vadd.f32 %v2089_v30, %v941_v25  ;;  %v1620_v25 = vld [vmem:[%s3126_s9] sm:$0xff] }
 0x166   : > { %v2206_v26 = vpop.f32.mrf.mxu1 }
 0x167   : > { %951 = vrot.lane.b32.xlu1 %v945_v24, %s2549_s26 }
 0x168   : > { %949 = vrot.lane.b32.xlu0 %v945_v24, %s2547_s11  ;;  %v1621_v24 = vld [vmem:[%s3126_s9 + $0x8] sm:$0xff] }
 0x1d1   : > { %v957_v27 = vpop.permute.xlu1 %956  ;;  %v955_v28 = vpop.permute.xlu0 %954 }
 0x1d2   : > { %2213 = vmatpush3.xpose.msk.msra.mxu1 %vm970_vm2, %v955_v28  ;;  %2218 = vmatpush3.xpose.msk.msra.mxu0 %vm970_vm2, %v957_v27 }
 0x1d3   : > { %2222 = vmatprep.subr.mxu1 %v2545_v0  ;;  %2227 = vmatprep.subr.mxu0 %v2545_v0 }
 0x1d5   : > { %v959_v29 = vpop.permute.xlu1 %958 }
 0x1d6   : > { %v948_v31 = vpop.permute.xlu0 %947 }
 0x1d7   : > { %2215 = vmatmul.mubr.msk.f32.vlgmr.msra.gmra.mxu1 %vm970_vm2, %v948_v31 }
 0x1d8   : > { %2223 = vmatpush3.xpose.msk.msra.mxu1 %vm970_vm2, %v959_v29  ;;  %2224 = vmatprep.mubr.msk.f32.mxu1 %vm2546_vm0, %v2545_v0 }
 0x1d9   : > { %v952_v33 = vpop.permute.xlu1 %951  ;;  %2232 = vmatprep.subr.mxu1 %v2545_v0 }
 0x1da   : > { %v950_v34 = vpop.permute.xlu0 %949 }
 0x1db   : > { %2220 = vmatmul.mubr.msk.f32.vlgmr.msra.gmra.mxu0 %vm970_vm2, %v950_v34  ;;  %2225 = vmatmul.mubr.msk.f32.vlgmr.msra.gmra.mxu1 %vm970_vm2, %v952_v33 }
 0x1dc   : > { %2228 = vmatpush3.msra.mxu0 %v942_v32  ;;  %2229 = vmatprep.mubr.msk.f32.mxu0 %vm2546_vm0, %v2545_v0 }
 0x1dd   : > { %2237 = vmatprep.subr.mxu0 %v2545_v0  ;;  %2234 = vmatprep.mubr.msk.f32.mxu1 %vm2546_vm0, %v2545_v0 }
 0x223   : > { %v1041_v35 = vpop.f32.mrf.mxu1 }
 0x224   : > { %v1267_v36 = vsel %vm970_vm2, %v1041_v35, -inf }
 0x225   : > { %1268 = vmax.xlane.f32.xlu0 %v1267_v36  ;;  %v2211_v37 = vpop.f32.mrf.mxu1 }
 0x297   : > { %v1115_v38 = vpop.f32.mrf.mxu1 }
 0x298   : > { %v1270_v39 = vsel %vm970_vm2, %v1115_v38, -inf }
 0x299   : > { %1271 = vmax.xlane.f32.xlu1 %v1270_v39  ;;  %v2216_v40 = vpop.f32.mrf.mxu1 }
 0x29b   : > { %v1189_v41 = vpop.f32.mrf.mxu0  ;;  %v1263_v42 = vpop.f32.mrf.mxu1 }
 0x29c   : > { %v1273_v43 = vsel %vm970_vm2, %v1189_v41, -inf  ;;  %v1276_v46 = vsel %vm970_vm2, %v1263_v42, -inf }
 0x29d   : > { %v2221_v44 = vpop.f32.mrf.mxu0  ;;  %1274 = vmax.xlane.f32.xlu0 %v1273_v43  ;;  %v2226_v45 = vpop.f32.mrf.mxu1 }
 0x2a1   : > { %1277 = vmax.xlane.f32.xlu0 %v1276_v46 }
 0x2aa   : > { %961 = vrot.lane.b32.xlu1 %v942_v32, %s2548_s2 }
 0x2ae   : > { %v1269_v47 = vpop.xlane.xlu0 %1268 }
 0x2af   : > { %v1279_v48 = vsub.f32 %v1041_v35, %v1269_v47 }
 0x2b1   : > { %v1283_v49 = vmul.f32 1.442695, %v1279_v48 }
 0x2b3   : > { %2368 = vpow2.f32 %v1283_v49 }
 0x2c0   : > { %v2369_v50 = vpop.eup %2368 }
 0x2c1   : > { %v1291_v51 = vsel %vm970_vm2, %v2369_v50, 0.0 }
 0x2ce   : > { %1292 = vadd.xlane.f32.xlu1 %v1291_v51 }
 0x322   : > { %v1272_v52 = vpop.xlane.xlu1 %1271 }
 0x323   : > { %v1280_v53 = vsub.f32 %v1115_v38, %v1272_v52  ;;  %v2103_v38 = vld [vmem:[%s3127_s10] ss:$0 sm:$0xff]  ;;  %v1835_v52 = vld [vmem:[%s3193_s3 + $0x78] sm:$0xff] }
 0x325   : > { %v1285_v54 = vmul.f32 1.442695, %v1280_v53  ;;  %v1834_v53 = vld [vmem:[%s3193_s3 + $0x70] sm:$0xff] }
 0x326   : > { %v1275_v55 = vpop.xlane.xlu0 %1274  ;;  %v962_v56 = vpop.permute.xlu1 %961 }
 0x327   : > { %2370 = vpow2.f32 %v1285_v54  ;;  %v1281_v57 = vsub.f32 %v1189_v41, %v1275_v55  ;;  %2233 = vmatpush3.msra.mxu1 %v962_v56  ;;  %v1833_v54 = vld [vmem:[%s3193_s3 + $0x68] sm:$0xff]  ;;  %v1832_v55 = vld [vmem:[%s3193_s3 + $0x60] sm:$0xff]  ;;  %v1831_v56 = vld [vmem:[%s3193_s3 + $0x58] sm:$0xff] }
 0x328   : > { %2242 = vmatprep.subr.mxu1 %v2545_v0 }
 0x329   : > { %v1287_v58 = vmul.f32 1.442695, %v1281_v57  ;;  %v1830_v57 = vld [vmem:[%s3193_s3 + $0x50] sm:$0xff] }
 0x32a   : > { %v1278_v59 = vpop.xlane.xlu0 %1277 }
 0x32b   : > { %2372 = vpow2.f32 %v1287_v58  ;;  %v1282_v60 = vsub.f32 %v1263_v42, %v1278_v59  ;;  %v1829_v58 = vld [vmem:[%s3193_s3 + $0x48] sm:$0xff]  ;;  %v1828_v59 = vld [vmem:[%s3193_s3 + $0x40] sm:$0xff] }
 0x32d   : > { %v1289_v61 = vmul.f32 1.442695, %v1282_v60  ;;  %v1827_v60 = vld [vmem:[%s3193_s3 + $0x38] sm:$0xff] }
 0x32f   : > { %2374 = vpow2.f32 %v1289_v61  ;;  %v1826_v61 = vld [vmem:[%s3193_s3 + $0x30] sm:$0xff] }
 0x334   : > { %v2371_v62 = vpop.eup %2370 }
 0x335   : > { %v1294_v63 = vsel %vm970_vm2, %v2371_v62, 0.0 }
 0x336   : > { %1295 = vadd.xlane.f32.xlu0 %v1294_v63  ;;  %v1824_v63 = vld [vmem:[%s3193_s3 + $0x20] sm:$0xff] }
 0x338   : > { %v2373_v1 = vpop.eup %2372 }
 0x339   : > { %v1297_v2 = vsel %vm970_vm2, %v2373_v1, 0.0 }
 0x33a   : > { %1298 = vadd.xlane.f32.xlu1 %v1297_v2 }
 0x33c   : > { %v2375_v3 = vpop.eup %2374 }
 0x33d   : > { %v1300_v4 = vsel %vm970_vm2, %v2375_v3, 0.0 }
 0x33e   : > { %1301 = vadd.xlane.f32.xlu0 %v1300_v4 }
 0x34b   : > { %967 = vrot.lane.b32.xlu1 %v942_v32, %s2549_s26  ;;  %s3192_s26 = sld [smem:[#allocation25_spill]] }
 0x351   : > { %v1738_v49 = vld [vmem:[%s3192_s26 + $0x18] sm:$0xff]  ;;  %v1735_v51 = vld [vmem:[%s3192_s26] sm:$0xff] }
 0x354   : > { %964 = vrot.lane.b32.xlu0 %v942_v32, %s2547_s11  ;;  %s3196_s11 = sld [smem:[#allocation26_spill]] }
 0x357   : > { %v1293_v6 = vpop.xlane.xlu1 %1292 }
 0x358   : > { %2376 = vrcp.f32 %v1293_v6 }
 0x365   : > { %v2377_v7 = vpop.eup %2376 }
 0x366   : > { %v1307_v8 = vmul.f32 %v2377_v7, %v2369_v50  ;;  %v1737_v50 = vld [vmem:[%s3192_s26 + $0x10] sm:$0xff]  ;;  %v2105_v7 = vld [vmem:[%s3194_s22] ss:$0 sm:$0xff]  ;;  %s3198_s22 = sld [smem:[#allocation17_spill]] }
 0x368   : > { %2230 = vmatmul.mubr.msk.f32.vlgmr.msra.gmra.mxu0 %vm970_vm2, %v1307_v8 }
 0x369   : > { %2239 = vmatprep.mubr.msk.f32.mxu0 %vm2546_vm0, %v2545_v0 }
 0x36c   : > { %p3202_p6 = scmp.ne.s32.totalorder %s3198_s22, 0 }
 0x3bf   : > { %v1296_v9 = vpop.xlane.xlu0 %1295 }
 0x3c0   : > { %2378 = vrcp.f32 %v1296_v9  ;;  %v2106_v9 = vld [vmem:[%s3195_s12] ss:$0 sm:$0xff]  ;;  %s3199_s12 = sld [smem:[#allocation29_spill]] }
 0x3c3   : > { %v1299_v10 = vpop.xlane.xlu1 %1298 }
 0x3c4   : > { %2380 = vrcp.f32 %v1299_v10 }
 0x3c7   : > { %v1302_v11 = vpop.xlane.xlu0 %1301  ;;  %v968_v15 = vpop.permute.xlu1 %967 }
 0x3c8   : > { %2382 = vrcp.f32 %v1302_v11 }
 0x3cb   : > { %v965_v12 = vpop.permute.xlu0 %964 }
 0x3cc   : > { %2238 = vmatpush3.msra.mxu0 %v965_v12  ;;  %v1822_v12 = vld [vmem:[%s3193_s3 + $0x10] sm:$0xff] }
 0x3cd   : > { %v2379_v13 = vpop.eup %2378  ;;  %2247 = vmatprep.subr.mxu0 %v2545_v0 }
 0x3ce   : > { %v1308_v14 = vmul.f32 %v2379_v13, %v2371_v62  ;;  %v1825_v62 = vld [vmem:[%s3193_s3 + $0x28] sm:$0xff] }
 0x3cf   : > { %v1821_v13 = vld [vmem:[%s3193_s3 + $0x8] sm:$0xff] }
 0x3d0   : > { %2235 = vmatmul.mubr.msk.f32.vlgmr.msra.gmra.mxu1 %vm970_vm2, %v1308_v14  ;;  %v1820_v14 = vld [vmem:[%s3193_s3] sm:$0xff] }
 0x3d1   : > { %v2381_v16 = vpop.eup %2380  ;;  %2243 = vmatpush3.msra.mxu1 %v968_v15  ;;  %2244 = vmatprep.mubr.msk.f32.mxu1 %vm2546_vm0, %v2545_v0  ;;  %v2107_v15 = vld [vmem:[%s3196_s11] ss:$0 sm:$0xff]  ;;  %s3201_s11 = sld [smem:[#allocation31_spill]] }
 0x3d2   : > { %v1309_v17 = vmul.f32 %v2381_v16, %v2373_v1  ;;  %2258 = vmatprep.subr.mxu1 %v2545_v0  ;;  %v1823_v1 = vld [vmem:[%s3193_s3 + $0x18] sm:$0xff] }
 0x3d4   : > { %2240 = vmatmul.mubr.msk.f32.vlgmr.msra.gmra.mxu0 %vm970_vm2, %v1309_v17 }
 0x3d5   : > { %v2383_v18 = vpop.eup %2382  ;;  %2255 = vmatprep.mubr.msk.f32.mxu0 %vm2546_vm0, %v2545_v0  ;;  %2248 = vmatpush3.msra.mxu0 %v1623_v22 }
 0x3d6   : > { %v1310_v19 = vmul.f32 %v2383_v18, %v2375_v3  ;;  %2249 = vmatprep.subr.mxu0 %v2545_v0 }
 0x3d7   : > { %2250 = vmatpush3.msra.mxu0 %v1622_v23 }
 0x3d8   : > { %2245 = vmatmul.mubr.msk.f32.vlgmr.msra.gmra.mxu1 %vm970_vm2, %v1310_v19  ;;  %2251 = vmatprep.subr.mxu0 %v2545_v0 }
 0x3d9   : > { %2266 = vmatprep.mubr.msk.f32.mxu1 %vm2546_vm0, %v2545_v0  ;;  %2252 = vmatpush3.msra.mxu0 %v1621_v24 }
 0x3da   : > { %2253 = vmatprep.subr.mxu0 %v2545_v0  ;;  %2259 = vmatpush3.msra.mxu1 %v1738_v49 }
 0x3db   : > { %2254 = vmatpush3.msra.mxu0 %v1620_v25  ;;  %2260 = vmatprep.subr.mxu1 %v2545_v0 }
 0x3dc   : > { %2269 = vmatprep.subr.mxu0 %v2545_v0  ;;  %2261 = vmatpush3.msra.mxu1 %v1737_v50 }
 0x3dd   : > { %2262 = vmatprep.subr.mxu1 %v2545_v0 }
 0x428   : > { %v1380_v20 = vpop.f32.mrf.mxu0 }
 0x42a   : > { %v2231_v21 = vpop.f32.mrf.mxu0 }
 0x490   : > { %v1453_v26 = vpop.f32.mrf.mxu1 }
 0x491   : > { %1604 = vrot.lane.b32.xlu1 %v1453_v26, %s2550_s20  ;;  %s2113_s20 = sshll.u32 %s2675_s1, 7  ;;  %s2478_s1 = scalar_lea.vmem %s2477_s17, 256 }
 0x492   : > { %v2236_v27 = vpop.f32.mrf.mxu1  ;;  %s1956_s2 = scalar_lea.hbm %s3201_s11, %s2113_s20 }
 0x494   : > { %v1526_v28 = vpop.f32.mrf.mxu0 }
 0x495   : > { %1608 = vrot.lane.b32.xlu0 %v1526_v28, %s2551_s21  ;;  %s688_s21 = scalar_lea.vmem [#allocation8], %s2810_s16 }
 0x496   : > { %v2241_v29 = vpop.f32.mrf.mxu0 }
 0x498   : > { %v1599_v30 = vpop.f32.mrf.mxu1 }
 0x499   : > { %1612 = vrot.lane.b32.xlu1 %v1599_v30, %s2552_s0  ;;  %s1958_s0 = sshll.u32 %s688_s21, 4  ;;  %s1959_s0 = int_to_ptr.vmem [resolvable:$true] %s1958_s0 }
 0x49a   : > { %v2246_v31 = vpop.f32.mrf.mxu1  ;;  %p2479_p1 = scmp.lt.s32.totalorder %s1959_s0, %s2477_s17 }
 0x503   : > { %v1605_v32 = vpop.permute.xlu1 %1604 }
 0x504   : > { %v1615_v34 = vsel %vm970_vm2, %v1380_v20, %v1605_v32  ;;  %v2109_v20 = vld [vmem:[%s3197_s28] ss:$0 sm:$0xff]  ;;  %s2472_s28 = scalar_lea.vmem %s1959_s0, 128 }
 0x505   : > { %p2473_p13 = scmp.ne.s32.totalorder %s1959_s0, %s2472_s28  ;;  %p2480_p3 = scmp.lt.s32.totalorder %s2478_s1, %s2472_s28 }
 0x507   : > { %v1609_v33 = vpop.permute.xlu0 %1608  ;;  %p2474_p8 = pnand %p2473_p13, %p3202_p6  ;;  %p2481_p9 = por %p2480_p3, %p2479_p1 }
 0x508   : > { %v1617_v35 = vsel %vm1616_vm3, %v1615_v34, %v1609_v33  ;;  %v2110_v34 = vld [vmem:[%s3199_s12] ss:$0 sm:$0xff] }
 0x509   : > { %p2475_p10 = pneg %p2474_p8 }
 0x50b   : > { %v1613_v36 = vpop.permute.xlu1 %1612  ;;  %p2482_p0 = pnand %p2481_p9, %p2475_p10 }
 0x50c   : > { %v1619_v37 = vsel %vm1618_vm4, %v1617_v35, %v1613_v36  ;;  %v2111_v36 = vld [vmem:[%s3200_s25] ss:$0 sm:$0xff] }
 0x50d   : > { %2256 = vmatmul.mubr.msk.f32.vlgmr.msra.gmra.mxu0 %vm703_vm1, %v1619_v37 }
 0x50e   : > { %2301 = vmatprep.mubr.msk.f32.mxu0 %vm2546_vm0, %v2545_v0  ;;  %2270 = vmatpush3.msra.mxu0 %v1835_v52 }
 0x50f   : > { %2271 = vmatprep.subr.mxu0 %v2545_v0 }
 0x510   : > { %2272 = vmatpush3.msra.mxu0 %v1834_v53 }
 0x511   : > { %2273 = vmatprep.subr.mxu0 %v2545_v0 }
 0x512   : > { %2274 = vmatpush3.msra.mxu0 %v1833_v54 }
 0x513   : > { %2275 = vmatprep.subr.mxu0 %v2545_v0 }
 0x514   : > { %2276 = vmatpush3.msra.mxu0 %v1832_v55 }
 0x515   : > { %2277 = vmatprep.subr.mxu0 %v2545_v0 }
 0x516   : > { %2278 = vmatpush3.msra.mxu0 %v1831_v56 }
 0x517   : > { %2279 = vmatprep.subr.mxu0 %v2545_v0 }
 0x518   : > { %2280 = vmatpush3.msra.mxu0 %v1830_v57 }
 0x519   : > { %2281 = vmatprep.subr.mxu0 %v2545_v0 }
 0x51a   : > { %2282 = vmatpush3.msra.mxu0 %v1829_v58 }
 0x51b   : > { %2283 = vmatprep.subr.mxu0 %v2545_v0 }
 0x51c   : > { %2284 = vmatpush3.msra.mxu0 %v1828_v59 }
 0x51d   : > { %2285 = vmatprep.subr.mxu0 %v2545_v0 }
 0x51e   : > { %2286 = vmatpush3.msra.mxu0 %v1827_v60 }
 0x51f   : > { %2287 = vmatprep.subr.mxu0 %v2545_v0 }
 0x520   : > { %2288 = vmatpush3.msra.mxu0 %v1826_v61 }
 0x521   : > { %2289 = vmatprep.subr.mxu0 %v2545_v0 }
 0x522   : > { %2290 = vmatpush3.msra.mxu0 %v1825_v62 }
 0x523   : > { %2291 = vmatprep.subr.mxu0 %v2545_v0 }
 0x524   : > { %2292 = vmatpush3.msra.mxu0 %v1824_v63 }
 0x525   : > { %2293 = vmatprep.subr.mxu0 %v2545_v0 }
 0x526   : > { %2294 = vmatpush3.msra.mxu0 %v1823_v1 }
 0x527   : > { %2295 = vmatprep.subr.mxu0 %v2545_v0 }
 0x528   : > { %2296 = vmatpush3.msra.mxu0 %v1822_v12 }
 0x529   : > { %2297 = vmatprep.subr.mxu0 %v2545_v0 }
 0x52a   : > { %2298 = vmatpush3.msra.mxu0 %v1821_v13 }
 0x52b   : > { %2299 = vmatprep.subr.mxu0 %v2545_v0 }
 0x52c   : > { %2300 = vmatpush3.msra.mxu0 %v1820_v14 }
 0x5cd   : > { %v1700_v39 = vpop.f32.mrf.mxu0 }
 0x5ce   : > { %v1701_v40 = vadd.f32 %v2103_v38, %v1700_v39 }
 0x5cf   : > { %v2257_v41 = vpop.f32.mrf.mxu0 }
 0x5d0   : > { %v1704_v42 = vadd.f32 %v1701_v40, %v2844_v5  ;;  %v1736_v5 = vld [vmem:[%s3192_s26 + $0x8] sm:$0xff] }
 0x5d1   : > { %2263 = vmatpush3.msra.mxu1 %v1736_v5 }
 0x5d2   : > { %v1707_v43 = vsel %vm703_vm1, %v1704_v42, 0.0  ;;  %2264 = vmatprep.subr.mxu1 %v2545_v0 }
 0x5d3   : > { %1708 = vadd.xlane.f32.xlu0 %v1707_v43  ;;  %2265 = vmatpush3.msra.mxu1 %v1735_v51 }
 0x65c   : > { %v1709_v44 = vpop.xlane.xlu0 %1708 }
 0x65d   : > { %v1711_v45 = vmul.f32 0.03125, %v1709_v44 }
 0x65f   : > { %v1712_v46 = vsub.f32 %v1704_v42, %v1711_v45 }
 0x661   : > { %v1713_v47 = vmul.f32 %v1712_v46, %v1712_v46 }
 0x663   : > { %v1714_v48 = vsel %vm703_vm1, %v1713_v47, 0.0 }
 0x664   : > { %1715 = vadd.xlane.f32.xlu1 %v1714_v48 }
 0x6ed   : > { %v1716_v2 = vpop.xlane.xlu1 %1715 }
 0x6ee   : > { %v1717_v3 = vmul.f32 0.03125, %v1716_v2 }
 0x6f0   : > { %v1718_v4 = vadd.f32 1e-05, %v1717_v3 }
 0x6f2   : > { %2384 = vrsqrt.f32 %v1718_v4 }
 0x6ff   : > { %v2385_v6 = vpop.eup %2384 }
 0x700   : > { %v1720_v8 = vmul.f32 %v2385_v6, %v1712_v46 }
 0x702   : > { %v1727_v10 = vmul.f32 %v2105_v7, %v1720_v8 }
 0x704   : > { %v1734_v11 = vadd.f32 %v2106_v9, %v1727_v10 }
 0x706   : > { %2267 = vmatmul.mubr.msk.f32.vlgmr.msra.gmra.mxu1 %vm703_vm1, %v1734_v11 }
 0x7c6   : > { %v1815_v16 = vpop.f32.mrf.mxu1 }
 0x7c7   : > { %v1816_v17 = vadd.f32 %v2107_v15, %v1815_v16 }
 0x7c8   : > { %v2268_v18 = vpop.f32.mrf.mxu1 }
 0x7c9   : > { %v1819_v19 = vmax.f32 %v1816_v17, 0.0 }
 0x7cb   : > { %2302 = vmatmul.mubr.f32.vlgmr.msra.gmra.mxu0 %v1819_v19 }
 0x88b   : > { %v1909_v21 = vpop.f32.mrf.mxu0 }
 0x88c   : > { %v1910_v22 = vadd.f32 %v2109_v20, %v1909_v21 }
 0x88d   : > { %v2303_v23 = vpop.f32.mrf.mxu0 }
 0x88e   : > { %v1913_v24 = vadd.f32 %v1910_v22, %v1734_v11 }
 0x890   : > { %v1916_v0 = vsel %vm703_vm1, %v1913_v24, 0.0 }
 0x891   : > { %1917 = vadd.xlane.f32.xlu0 %v1916_v0 }
 0x91a   : > { %v1918_v25 = vpop.xlane.xlu0 %1917 }
 0x91b   : > { %v1919_v26 = vmul.f32 0.03125, %v1918_v25 }
 0x91d   : > { %v1920_v27 = vsub.f32 %v1913_v24, %v1919_v26 }
 0x91f   : > { %v1921_v28 = vmul.f32 %v1920_v27, %v1920_v27 }
 0x921   : > { %v1922_v29 = vsel %vm703_vm1, %v1921_v28, 0.0 }
 0x922   : > { %1923 = vadd.xlane.f32.xlu0 %v1922_v29 }
 0x9ab   : > { %v1924_v30 = vpop.xlane.xlu0 %1923 }
 0x9ac   : > { %v1925_v31 = vmul.f32 0.03125, %v1924_v30 }
 0x9ae   : > { %v1926_v32 = vadd.f32 1e-05, %v1925_v31 }
 0x9b0   : > { %2386 = vrsqrt.f32 %v1926_v32 }
 0x9bd   : > { %v2387_v33 = vpop.eup %2386 }
 0x9be   : > { %v1928_v35 = vmul.f32 %v2387_v33, %v1920_v27 }
 0x9c0   : > { %v1935_v37 = vmul.f32 %v2110_v34, %v1928_v35 }
 0x9c2   : > { %v1942_v38 = vadd.f32 %v2111_v36, %v1935_v37 }
 0x9c4   : > { %1943 = vst.msk [vmem:[%s688_s21] sm:$0xff] %vm703_vm1, %v1942_v38 }
 0x9c5   : > { %2485 = shalt.err (!%p2482_p0)
}
 0x9c6   : > { %s2486_s16 = scalar_lea.hbm %s1956_s2, 128  ;;  %s2490_s15 = scalar_lea.hbm %s3201_s11, 256 }
 0x9c7   : > { %p2487_p11 = scmp.ne.s32.totalorder %s1956_s2, %s2486_s16  ;;  %p2491_p5 = scmp.lt.s32.totalorder %s1956_s2, %s3201_s11 }
 0x9c8   : > { %p2492_p7 = scmp.lt.s32.totalorder %s2490_s15, %s2486_s16 }
 0x9c9   : > { %p2488_p12 = pnand %p2487_p11, %p3202_p6 }
 0x9ca   : > { %p2493_p2 = por %p2492_p7, %p2491_p5 }
 0x9cb   : > { %p2489_p4 = pneg %p2488_p12 }
 0x9cd   : > { %p2494_p13 = pnand %p2493_p2, %p2489_p4 }
 0x9cf   : > { %2497 = shalt.err (!%p2494_p13)
}
 0x9d0   : > { %2310 = dma.vmem_to_hbm [thread:$0]  (%p3202_p6), %s1959_s0, 128, %s1956_s2, %s1945_s27  }
 0x9d1 PF: > { %s3203_s20 = sld [smem:[#allocation12_spill]] }
 0x9d2   : > { %s3204_s21 = sld [smem:[#allocation18_spill]] }
 0x9d3   : > { %s3205_s29 = sld [smem:[#allocation14_spill]] }
 0x9d7   : > { %s1970_s23 = sand.u32 1, %s3203_s20  }
 0x9d8   : > { %p3206_p8 = scmp.ne.s32.totalorder %s3204_s21, 0  ;;  %s1971_s28 = scalar_lea.sflag [#allocation4], %s1970_s23 }
 0x9d9   : > { %p3207_p10 = scmp.ge.s32.totalorder %s3205_s29, 2 }
 0x9db   : > { %p2323_p1 = pnand %p3207_p10, %p3206_p8 }
 0x9dd   : > { %p2324_p3 = pneg %p2323_p1 }
 0x9df   : > { %2523 = dma.done.wait (%p2324_p3), %s1971_s28, 128  }
 0x9e0   : > { %2525 = vsyncadd (%p2324_p3), %s1971_s28, 4294967168  ;;  %s3208_s21 = sld [smem:[#allocation15_spill]]  ;;  %s3211_s0 = smov %s2532_s30 }
 0x9e1   : > { %s3209_s19 = sld [smem:[#allocation13_spill]] }
 0x9e2   : > { %s3210_s20 = sld [smem:[#allocation16_spill]] }
 0x9e6   : > { %p35_p9 = scmp.ge.s32.totalorder %s3208_s21, 4  }
 0x9e7   : > { %s3212_s30 = smov %s3209_s19 }
 0x9e8   :  { %37 = sbr.rel (!%p35_p9) target bundleno = 21 (0x15), region = 165 }
 0x9ed   :  { %1976 = vsyncpa [#allocation3], 1 }
 0x9ee   :  { %1978 = vsyncpa [#allocation3 + $0x1], 1 }
 0x9ef   :  { %1979 = vsyncpa [#allocation6], 1 }
 0x9f0   :  { %1981 = vsyncpa [#allocation6 + $0x1], 1 }
 0x9f1   :  { %1982 = vsyncpa [#allocation4], 1 }
 0x9f2   :  { %1984 = vsyncpa [#allocation4 + $0x1], 1 }

</bundles_post_ra>
